<compile_context>
chip_gen: v7x
topology: tpu7x:2x2x1
jax: 0.10.0
libtpu: 0.0.40
codegen_flags: <defaults>
</compile_context>

<pallas_src>
import functools

import jax
import jax.numpy as jnp
from jax.experimental import pallas as pl
from jax.experimental.pallas import tpu as pltpu


# ---------------------------------------------------------------------------
# Fused kernel: forward (squared error) + aggregate (batch/feature mean)
# ---------------------------------------------------------------------------
def _fused_mse_mean_kernel(pred_ref, tgt_ref, out_ref, acc_ref, *, lanes, inv_n):
    """Grid = (batch_tiles [parallel], feature_tiles [reduction, last]).

    acc_ref: (TB, lanes) f32 running per-lane partial sums (VPU-only hot loop).
    out_ref: (1, 1, lanes) lane-dense, pre-normalized per-batch-tile partials,
             written once on the final reduction step.
    """
    j = pl.program_id(1)  # feature (reduction) axis — last grid axis

    @pl.when(j == 0)
    def _zero():
        acc_ref[...] = jnp.zeros_like(acc_ref)

    # Stream 128-lane chunks straight from the refs: no (TB, TF) intermediate.
    tf = pred_ref.shape[1]
    n_chunks = tf // lanes
    partial = None
    for k in range(n_chunks):  # small static unrolled chunk loop
        lo, hi = k * lanes, (k + 1) * lanes
        d = (pred_ref[:, lo:hi].astype(jnp.float32)
             - tgt_ref[:, lo:hi].astype(jnp.float32))
        sq = d * d
        partial = sq if partial is None else partial + sq
    acc_ref[...] += partial

    @pl.when(j == pl.num_programs(1) - 1)
    def _emit():
        # Fold the 1/(B*F) normalization in here (free VPU slack), then one
        # cross-sublane (XLU) reduce to a lane-dense row.
        scaled = acc_ref[...] * inv_n
        out_ref[...] = jnp.sum(scaled, axis=0, keepdims=True).reshape(out_ref.shape)


# ---------------------------------------------------------------------------
# Tiling / budget helpers
# ---------------------------------------------------------------------------
def _round_up(x: int, m: int) -> int:
    return ((x + m - 1) // m) * m


def _pick_tile(dim: int, target: int, quantum: int) -> int:
    """Largest multiple of `quantum` that divides `dim` and is <= target.

    `dim` is already padded to a multiple of `quantum`, so `quantum` itself is
    always a valid fallback (no whole-dim fallback that could blow VMEM).
    """
    target = max(quantum, (target // quantum) * quantum)
    if dim <= target:
        return dim
    t = target
    while t > quantum:
        if dim % t == 0:
            return t
        t -= quantum
    return quantum


def _vmem_cap_bytes() -> int:
    try:
        cap = int(getattr(pltpu.get_tpu_info(), "vmem_capacity_bytes"))
        if cap > 0:
            return cap
    except Exception:
        pass
    return 128 << 20


def fused_mse_mean(pred, target, *, tb_target=256, tf_target=4096):
    """Mean squared error over a (B, F) array, fused into one pallas_call.

    Equals mean-over-batch of the per-sample MSE (the original
    forward -> aggregate pipeline), since every row has the same F.
    Returns shape (1,) float32.
    """
    B, F = pred.shape
    in_item = jnp.dtype(pred.dtype).itemsize
    sub_q = {4: 8, 2: 16, 1: 32}.get(in_item, 8)
    lanes = 128

    # Pad to layout quanta (zeros in BOTH inputs contribute 0 to the sum,
    # and normalization uses the original B*F, so padding is exact).
    B_pad = _round_up(B, sub_q)
    F_pad = _round_up(F, lanes)
    if (B_pad, F_pad) != (B, F):
        pred = jnp.pad(pred, ((0, B_pad - B), (0, F_pad - F)))
        target = jnp.pad(target, ((0, B_pad - B), (0, F_pad - F)))

    TB = _pick_tile(B_pad, tb_target, sub_q)
    TF = _pick_tile(F_pad, tf_target, lanes)
    nb, nf = B_pad // TB, F_pad // TF

    # v7x has 2 TensorCores: make sure the "parallel" axis has >= 2 tiles so
    # megacore sharding actually splits work (no-op cost on 1-TC parts).
    if nb < 2 and TB > sub_q:
        alt = _pick_tile(B_pad, TB // 2, sub_q)
        if B_pad // alt >= 2:
            TB = alt
            nb = B_pad // TB

    # VMEM budget: 2 inputs x 2 pipeline buffers x tile + f32 accumulator +
    # output block buffers + headroom, capped per generation.
    phys_vmem = _vmem_cap_bytes()
    hard_cap = (48 << 20) if phys_vmem <= (64 << 20) else (96 << 20)
    tile_bytes = TB * TF * in_item
    vmem_need = 2 * 2 * tile_bytes + TB * lanes * 4 + 2 * lanes * 4 + (2 << 20)
    vmem_limit = int(min(max(vmem_need, 16 << 20), hard_cap))

    inv_n = 1.0 / float(B * F)  # original (unpadded) element count
    kernel = functools.partial(_fused_mse_mean_kernel, lanes=lanes, inv_n=inv_n)

    partials = pl.pallas_call(
        kernel,
        out_shape=jax.ShapeDtypeStruct((nb, 1, lanes), jnp.float32),
        grid_spec=pltpu.PrefetchScalarGridSpec(
            num_scalar_prefetch=0,
            grid=(nb, nf),  # batch tiles (parallel), feature tiles (reduction, last)
            in_specs=[
                pl.BlockSpec((TB, TF), lambda i, j: (i, j)),
                pl.BlockSpec((TB, TF), lambda i, j: (i, j)),
            ],
            out_specs=pl.BlockSpec((1, 1, lanes), lambda i, j: (i, 0, 0)),
            scratch_shapes=[pltpu.VMEM((TB, lanes), jnp.float32)],
        ),
        compiler_params=pltpu.CompilerParams(
            dimension_semantics=("parallel", "arbitrary"),
            vmem_limit_bytes=vmem_limit,
        ),
        cost_estimate=pl.CostEstimate(
            flops=3 * B_pad * F_pad,
            transcendentals=0,
            bytes_accessed=2 * in_item * B_pad * F_pad + nb * lanes * 4,
        ),
    )(pred, target)

    # Tiny final reduce of the already-normalized (nb, 1, 128) partials.
    total = jnp.sum(partials)
    return jnp.reshape(total, (1,)).astype(jnp.float32)


# ---------------------------------------------------------------------------
# Metric pipeline (mirrors the Lightning hook call order)
# ---------------------------------------------------------------------------
class PallasMSEMetric:
    """Concrete Metric whose forward is the fused Pallas MSE kernel.

    forward already folds the default aggregate (cat(...).mean(0) over the
    batch) into the kernel epilogue, so each step produces a (1,) scalar.
    """

    def __init__(self, name: str, reduce_group=None):
        self.name = name
        self.reduce_group = reduce_group
        self._step_vals = []

    # --- hooks -------------------------------------------------------------
    @staticmethod
    def input_convert(data):
        # default: identity (the kernel upcasts any <=16-bit dtype internally)
        return data

    def forward(self, pred, target):
        # fused forward + batch-mean aggregate (single pallas_call)
        return fused_mse_mean(pred, target)

    @staticmethod
    def output_convert(output):
        # default: at_least_1d
        return jnp.atleast_1d(output)

    def ddp_sync(self, tensor):
        # TODO(synk): multi-process gather_all_tensors has no single-device
        # Pallas equivalent here; single-process behaviour is identity.
        self._step_vals.append(tensor)
        return tensor

    def aggregate(self, *tensors):
        # default: torch.cat(tensors).mean(0). Per-step tensors here are (1,)
        # scalars, so this is a trivially small plain-JAX op (no kernel needed).
        return jnp.mean(jnp.concatenate(tensors, axis=0), axis=0)

    def ddp_reduce(self, output):
        synced = self.ddp_sync(output)
        return self.aggregate(synced)

    @staticmethod
    def compute(output):
        # default: identity
        return output

    @property
    def aggregated(self):
        aggr = self.aggregate(*self._step_vals)
        self.reset()
        return self.compute(aggr)

    def reset(self):
        self._step_vals = []

    # call order: input_convert -> forward -> output_convert -> ddp_reduce -> compute
    def __call__(self, pred, target):
        pred, target = self.input_convert((pred, target))
        out = self.forward(pred, target)
        out = self.output_convert(out)
        out = self.ddp_reduce(out)
        return self.compute(out)


if __name__ == "__main__":
    key = jax.random.PRNGKey(0)
    k1, k2, k3, k4 = jax.random.split(key, 4)

    # --- f32, aligned shapes -------------------------------------------------
    B, F = 8, 256
    pred = jax.random.normal(k1, (B, F), dtype=jnp.float32)
    target = jax.random.normal(k2, (B, F), dtype=jnp.float32)

    metric = PallasMSEMetric("mse")
    result = jax.block_until_ready(metric(pred, target))

    # reference: same pipeline in plain JAX
    # (mean over batch of per-sample MSE == overall mean of squared error)
    ref = jnp.mean(jnp.mean((pred - target) ** 2, axis=1))
    assert jnp.allclose(result, ref, rtol=1e-5, atol=1e-5), (result, ref)

    # multi-step `aggregated` path also works (MSE is symmetric in its args)
    _ = metric(target, pred)
    agg = jax.block_until_ready(metric.aggregated)
    assert jnp.allclose(agg, ref, rtol=1e-5, atol=1e-5), (agg, ref)

    # --- bf16, non-aligned shapes (exercises padding + dtype path) ----------
    B2, F2 = 6, 200
    pred2 = jax.random.normal(k3, (B2, F2), dtype=jnp.float32).astype(jnp.bfloat16)
    target2 = jax.random.normal(k4, (B2, F2), dtype=jnp.float32).astype(jnp.bfloat16)

    metric2 = PallasMSEMetric("mse_bf16")
    result2 = jax.block_until_ready(metric2(pred2, target2))
    ref2 = jnp.mean(
        jnp.mean(
            (pred2.astype(jnp.float32) - target2.astype(jnp.float32)) ** 2, axis=1
        )
    )
    assert jnp.allclose(result2, ref2, rtol=1e-5, atol=1e-5), (result2, ref2)

    print("KERNEL_OK")
</pallas_src>

<mosaic_0001>
module attributes {stable_mosaic.version = 11 : i64} {
  func.func @_fused_mse_mean_kernel(%arg0: i32, %arg1: i32, %arg2: memref<8x256xf32, #tpu.memory_space<vmem>>, %arg3: memref<8x256xf32, #tpu.memory_space<vmem>>, %arg4: memref<1x1x128xf32, #tpu.memory_space<vmem>>, %arg5: memref<8x128xf32, #tpu.memory_space<vmem>>) attributes {dimension_semantics = [#tpu.dimension_semantics<parallel>, #tpu.dimension_semantics<arbitrary>], iteration_bounds = array<i64: 1, 1>, scalar_prefetch = 0 : i64, scratch_operands = 1 : i64, tpu.core_type = #tpu.core_type<tc>, window_params = [{transform_indices = @transform_0, window_bounds = array<i64: 8, 256>}, {transform_indices = @transform_1, window_bounds = array<i64: 8, 256>}, {transform_indices = @transform_2, window_bounds = array<i64: 1, 1, 128>}]} {
    %c0_i32 = arith.constant 0 : i32
    %0 = arith.cmpi eq, %arg1, %c0_i32 : i32
    %1 = arith.extui %0 : i1 to i32
    %c0_i32_0 = arith.constant 0 : i32
    %2 = arith.cmpi ne, %1, %c0_i32_0 : i32
    scf.if %2 {
      %cst = arith.constant 0.000000e+00 : f32
      %18 = vector.broadcast %cst : f32 to vector<8x128xf32>
      %c0_13 = arith.constant 0 : index
      %c0_14 = arith.constant 0 : index
      %19 = vector.load %arg5[%c0_13, %c0_14] : memref<8x128xf32, #tpu.memory_space<vmem>>, vector<8x128xf32>
      tpu.vector_store %arg5[%c0_13, %c0_14], %18 {strides = array<i32>} : memref<8x128xf32, #tpu.memory_space<vmem>>, vector<8x128xf32>,
    } else {
    }
    %c0 = arith.constant 0 : index
    %c0_1 = arith.constant 0 : index
    %3 = vector.load %arg2[%c0, %c0_1] : memref<8x256xf32, #tpu.memory_space<vmem>>, vector<8x128xf32>
    %c0_2 = arith.constant 0 : index
    %c0_3 = arith.constant 0 : index
    %4 = vector.load %arg3[%c0_2, %c0_3] : memref<8x256xf32, #tpu.memory_space<vmem>>, vector<8x128xf32>
    %5 = arith.subf %3, %4 : vector<8x128xf32>
    %6 = arith.mulf %5, %5 : vector<8x128xf32>
    %c0_4 = arith.constant 0 : index
    %c128 = arith.constant 128 : index
    %7 = vector.load %arg2[%c0_4, %c128] : memref<8x256xf32, #tpu.memory_space<vmem>>, vector<8x128xf32>
    %c0_5 = arith.constant 0 : index
    %c128_6 = arith.constant 128 : index
    %8 = vector.load %arg3[%c0_5, %c128_6] : memref<8x256xf32, #tpu.memory_space<vmem>>, vector<8x128xf32>
    %9 = arith.subf %7, %8 : vector<8x128xf32>
    %10 = arith.mulf %9, %9 : vector<8x128xf32>
    %11 = arith.addf %6, %10 : vector<8x128xf32>
    %c0_7 = arith.constant 0 : index
    %c0_8 = arith.constant 0 : index
    %12 = vector.load %arg5[%c0_7, %c0_8] : memref<8x128xf32, #tpu.memory_space<vmem>>, vector<8x128xf32>
    %13 = arith.addf %12, %11 : vector<8x128xf32>
    %c0_9 = arith.constant 0 : index
    %c0_10 = arith.constant 0 : index
    %14 = vector.load %arg5[%c0_9, %c0_10] : memref<8x128xf32, #tpu.memory_space<vmem>>, vector<8x128xf32>
    tpu.vector_store %arg5[%c0_9, %c0_10], %13 {strides = array<i32>} : memref<8x128xf32, #tpu.memory_space<vmem>>, vector<8x128xf32>,
    %c0_i32_11 = arith.constant 0 : i32
    %15 = arith.cmpi eq, %arg1, %c0_i32_11 : i32
    %16 = arith.extui %15 : i1 to i32
    %c0_i32_12 = arith.constant 0 : i32
    %17 = arith.cmpi ne, %16, %c0_i32_12 : i32
    scf.if %17 {
      %c0_13 = arith.constant 0 : index
      %c0_14 = arith.constant 0 : index
      %18 = vector.load %arg5[%c0_13, %c0_14] : memref<8x128xf32, #tpu.memory_space<vmem>>, vector<8x128xf32>
      %cst = arith.constant 4.8828125E-4 : f32
      %19 = vector.broadcast %cst : f32 to vector<8x128xf32>
      %20 = arith.mulf %18, %19 : vector<8x128xf32>
      %cst_15 = arith.constant dense<0.000000e+00> : vector<128xf32>
      %21 = vector.multi_reduction <add>, %20, %cst_15 [0] : vector<8x128xf32> to vector<128xf32>
      %22 = vector.shape_cast %21 : vector<128xf32> to vector<1x128xf32>
      %23 = vector.shape_cast %22 : vector<1x128xf32> to vector<1x1x128xf32>
      %c0_16 = arith.constant 0 : index
      %c0_17 = arith.constant 0 : index
      %c0_18 = arith.constant 0 : index
      %24 = vector.load %arg4[%c0_16, %c0_17, %c0_18] : memref<1x1x128xf32, #tpu.memory_space<vmem>>, vector<1x1x128xf32>
      tpu.vector_store %arg4[%c0_16, %c0_17, %c0_18], %23 {strides = array<i32>} : memref<1x1x128xf32, #tpu.memory_space<vmem>>, vector<1x1x128xf32>,
    } else {
    }
    return
  }
  func.func @transform_0(%arg0: i32, %arg1: i32) -> (i32, i32) {
    %c0_i32 = arith.constant 0 : i32
    return %arg0, %arg1 : i32, i32
  }
  func.func @transform_1(%arg0: i32, %arg1: i32) -> (i32, i32) {
    %c0_i32 = arith.constant 0 : i32
    return %arg0, %arg1 : i32, i32
  }
  func.func @transform_2(%arg0: i32, %arg1: i32) -> (i32, i32, i32) {
    %c0_i32 = arith.constant 0 : i32
    %c0_i32_0 = arith.constant 0 : i32
    %c0_i32_1 = arith.constant 0 : i32
    return %arg0, %c0_i32, %c0_i32_0 : i32, i32, i32
  }
}

</mosaic_0001>

<bundles_post_ra>
// kernel: tpu_custom_call.1
= control target key start
LH: loop header
LB: loop body
LE: loop exit
PB: predicated region body
PF: predicated region fallthrough
CT: control target
= control target key end

     0   :  { %7 = vsyncpa [#allocation4], 0  ;;  %s210_s0 = inlined_call_operand.hbm [shape: f32[8,256], index: 0, kind: input, shape index: {}]   ;;  %s211_s1 = inlined_call_operand.hbm [shape: f32[8,256], index: 1, kind: input, shape index: {}]   ;;  %s212_s2 = inlined_call_operand.hbm [shape: f32[1,1,128], index: 2, kind: output, shape index: {}]  }
   0x1   :  { %8 = vsyncpa [#allocation7], 0 }
   0x2   :  { %9 = vsyncpa [#allocation5], 0  ;;  %s156_s9 = smov [#allocation3]   ;;  %s157_s11 = smov [#allocation6]  }
   0x3   :  { %s16_s10 = sshll.u32 %s156_s9, 4  ;;  %s26_s12 = sshll.u32 %s157_s11, 4  ;;  %s17_s10 = int_to_ptr.vmem [resolvable:$true] %s16_s10  ;;  %s27_s12 = int_to_ptr.vmem [resolvable:$true] %s26_s12 }
   0x4   :  { %s84_s15 = scalar_lea.hbm %s210_s0, 256 }
   0x5   :  { %p85_p0 = scmp.ne.s32.totalorder %s210_s0, %s84_s15  ;;  %p88_p1 = scmp.lt.u32.totalorder %s84_s15, %s210_s0 }
   0x7   :  { %p90_p2 = pnand %p88_p1, %p85_p0 }
   0x9   :  { %93 = shalt.err (!%p90_p2)
}
   0xa   :  { %s94_s20 = scalar_lea.vmem %s17_s10, 256  ;;  %p99_p4 = scmp.lt.s32.totalorder %s17_s10, %s17_s10 }
   0xb   :  { %p95_p3 = scmp.ne.s32.totalorder %s17_s10, %s94_s20  ;;  %p100_p5 = scmp.lt.s32.totalorder %s94_s20, %s94_s20 }
   0xd   :  { %p101_p6 = por %p100_p5, %p99_p4 }
   0xf   :  { %p102_p7 = pnand %p101_p6, %p95_p3 }
  0x11   :  { %105 = shalt.err (!%p102_p7)
}
  0x12   :  { %19 = dma.hbm_to_vmem [thread:$0]  %s210_s0, 256, %s17_s10, [#allocation4]  }
  0x13   :  { %s106_s25 = scalar_lea.hbm %s211_s1, 256 }
  0x14   :  { %p107_p8 = scmp.ne.s32.totalorder %s211_s1, %s106_s25  ;;  %p110_p9 = scmp.lt.u32.totalorder %s106_s25, %s211_s1 }
  0x16   :  { %p112_p10 = pnand %p110_p9, %p107_p8 }
  0x18   :  { %115 = shalt.err (!%p112_p10)
}
  0x19   :  { %s116_s30 = scalar_lea.vmem %s27_s12, 256  ;;  %p121_p12 = scmp.lt.s32.totalorder %s27_s12, %s27_s12 }
  0x1a   :  { %p117_p11 = scmp.ne.s32.totalorder %s27_s12, %s116_s30  ;;  %p122_p13 = scmp.lt.s32.totalorder %s116_s30, %s116_s30 }
  0x1c   :  { %p123_p0 = por %p122_p13, %p121_p12 }
  0x1e   :  { %p124_p1 = pnand %p123_p0, %p117_p11 }
  0x20   :  { %127 = shalt.err (!%p124_p1)
}
  0x21   :  { %29 = dma.hbm_to_vmem [thread:$0]  %s211_s1, 256, %s27_s12, [#allocation7]  }
  0x22   :  { %150 = dma.done.wait [#allocation4], 256  }
  0x23   :  { %151 = vsyncadd [#allocation4], 4294967040 }
  0x24   :  { %152 = dma.done.wait [#allocation7], 256  }
  0x25   :  { %153 = vsyncadd [#allocation7], 4294967040  ;;  %v41_v0 = vld [vmem:[#allocation3] sm:$0xff]  ;;  %v42_v1 = vld [vmem:[#allocation6] sm:$0xff]  ;;  %s158_s4 = smov [#allocation8]  }
  0x26   :  { %v45_v2 = vld [vmem:[#allocation3 + $0x8] sm:$0xff]  ;;  %v43_v3 = vsub.f32 %v41_v0, %v42_v1  ;;  %v46_v4 = vld [vmem:[#allocation6 + $0x8] sm:$0xff]  ;;  %s71_s1 = sshll.u32 %s158_s4, 4  ;;  %s72_s1 = int_to_ptr.vmem [resolvable:$true] %s71_s1 }
  0x27   :  { %v47_v5 = vsub.f32 %v45_v2, %v46_v4  ;;  %s128_s5 = scalar_lea.vmem %s72_s1, 16  ;;  %s132_s6 = scalar_lea.vmem %s72_s1, 32 }
  0x28   :  { %v44_v6 = vmul.f32 %v43_v3, %v43_v3  ;;  %p129_p2 = scmp.ne.s32.totalorder %s72_s1, %s128_s5  ;;  %p133_p3 = scmp.lt.s32.totalorder %s72_s1, %s72_s1 }
  0x29   :  { %v48_v7 = vmul.f32 %v47_v5, %v47_v5  ;;  %p134_p4 = scmp.lt.s32.totalorder %s132_s6, %s128_s5 }
  0x2b   :  { %v49_v8 = vadd.f32 %v48_v7, %v44_v6  ;;  %p135_p5 = por %p134_p4, %p133_p3 }
  0x2d   :  { %v57_v9 = vmul.f32 0.00048828125, %v49_v8  ;;  %p136_p6 = pnand %p135_p5, %p129_p2 }
  0x2f   :  { %v58_v10 = vrot.slane %v57_v9, 4 }
  0x31   :  { %v59_v11 = vadd.f32 %v58_v10, %v57_v9 }
  0x33   :  { %v60_v12 = vrot.slane %v59_v11, 2 }
  0x35   :  { %v61_v13 = vadd.f32 %v60_v12, %v59_v11 }
  0x37   :  { %v62_v14 = vrot.slane %v61_v13, 1 }
  0x39   :  { %v63_v15 = vadd.f32 %v62_v14, %v61_v13 }
  0x3b   :  { %64 = vst [vmem:[#allocation8] sm:$0x1] %v63_v15 }
  0x3c   :  { %139 = shalt.err (!%p136_p6)
}
  0x3d   :  { %s140_s9 = scalar_lea.hbm %s212_s2, 16 }
  0x3e   :  { %p141_p7 = scmp.ne.s32.totalorder %s212_s2, %s140_s9  ;;  %p144_p8 = scmp.lt.u32.totalorder %s140_s9, %s212_s2 }
  0x40   :  { %p146_p9 = pnand %p144_p8, %p141_p7 }
  0x42   :  { %149 = shalt.err (!%p146_p9)
}
  0x43   :  { %74 = dma.vmem_to_hbm [thread:$0]  %s72_s1, 16, %s212_s2, [#allocation5]  }
  0x44   :  { %154 = dma.done.wait [#allocation5], 16  }
  0x45   :  { %155 = vsyncadd [#allocation5], 4294967280 }
  0x46   :  { %78 = vsyncpa [#allocation4], 1 }
  0x47   :  { %79 = vsyncpa [#allocation7], 1 }
  0x48   :  { %80 = vsyncpa [#allocation5], 1 }

</bundles_post_ra>
